<compile_context>
chip_gen: v7x
topology: tpu7x:2x2x1
jax: 0.10.0
libtpu: 0.0.40
codegen_flags: <defaults>
</compile_context>

<pallas_src>
import functools

import numpy as np
import jax
import jax.numpy as jnp
from jax.experimental import pallas as pl
from jax.experimental.pallas import tpu as pltpu


def _round_up(a, b):
    return ((a + b - 1) // b) * b


def _cdiv(a, b):
    return (a + b - 1) // b


def _vmem_capacity_bytes():
    """Generation-aware VMEM capacity (v5e/v6e: 128 MiB, v7x: 64 MiB)."""
    try:
        info = pltpu.get_tpu_info()
        cap = int(getattr(info, "vmem_capacity_bytes", 0) or 0)
        if cap > 0:
            return cap
    except Exception:
        pass
    return 64 << 20  # conservative default (v7x per-TensorCore VMEM)


# ----------------------------- kernels --------------------------------------


def _qlinear_kernel_single_k(p_ref, w_ref, b_ref, o_ref, *, bmax, out_max):
    # p_ref: [TM, K]   activation tile (compute_dtype)
    # w_ref: [K,  TN]  pre-quantized weight tile (compute_dtype)
    # b_ref: [1,  TN]  pre-clipped bias tile (f32)
    # o_ref: [TM, TN]  output tile
    z = jnp.dot(p_ref[...], w_ref[...], preferred_element_type=jnp.float32)
    z = jnp.clip(z, -bmax, bmax) + b_ref[...]        # q_b(Z) + q_b(bias)
    z = jnp.clip(z, -out_max, out_max)               # q_b then q_a, fused
    o_ref[...] = z.astype(o_ref.dtype)


def _qlinear_kernel_multi_k(p_ref, w_ref, b_ref, o_ref, acc_ref, *, bmax, out_max):
    # K-tiled path: f32 accumulator persists across the (last, "arbitrary") K axis.
    k = pl.program_id(2)

    @pl.when(k == 0)
    def _init():
        acc_ref[...] = jnp.zeros_like(acc_ref)

    acc_ref[...] += jnp.dot(p_ref[...], w_ref[...],
                            preferred_element_type=jnp.float32)

    @pl.when(k == pl.num_programs(2) - 1)
    def _finalize():
        z = acc_ref[...]
        z = jnp.clip(z, -bmax, bmax) + b_ref[...]
        z = jnp.clip(z, -out_max, out_max)
        o_ref[...] = z.astype(o_ref.dtype)


# ----------------------------- wrapper ---------------------------------------


def prepare_qlinear_params(weight, bias, qbits, *, relu=False,
                           compute_dtype=jnp.bfloat16):
    """One-time parameter transform. Cache the result per parameter update and
    pass it via qlinear_forward(..., prepared=...) to keep the per-call HBM
    weight round-trip out of the hot path."""
    out_features, in_features = weight.shape
    nlvar = 2 if relu else 1
    wmult = np.float32(2 ** np.floor(np.log2(np.sqrt(3.0 * nlvar / in_features))))
    wmax = float(qbits['wmax'])
    bmax = float(qbits['bmax'])
    wq = wmult * jnp.clip(weight.astype(jnp.float32), -wmax, wmax)        # q_w ('F')
    w_t = wq.T.astype(compute_dtype)                                      # [K, N]
    b_q = jnp.clip(bias.astype(jnp.float32), -bmax, bmax).reshape(1, -1)  # q_b(bias)
    return w_t, b_q


def qlinear_forward(x, weight=None, bias=None, qbits=None, *, relu=False,
                    postact=True, compute_dtype=jnp.bfloat16,
                    out_dtype=jnp.float32, prepared=None):
    """x: [..., in_features], weight: [out_features, in_features], bias: [out_features].
    If `prepared` (from prepare_qlinear_params) is given, weight/bias are ignored."""
    orig_shape = x.shape
    K = orig_shape[-1]
    bmax = float(qbits['bmax'])
    amax = float(qbits['amax']) if postact else None
    # clip(clip(z, bmax), amax) == clip(z, min(bmax, amax)) -> single epilogue clip.
    out_max = min(bmax, amax) if postact else bmax

    if prepared is None:
        prepared = prepare_qlinear_params(weight, bias, qbits, relu=relu,
                                          compute_dtype=compute_dtype)
    w_t, b_q = prepared
    assert w_t.shape[0] == K
    N = w_t.shape[1]
    b_q = b_q.astype(jnp.float32).reshape(1, N)

    p = x.reshape(-1, K).astype(compute_dtype)        # [M, K]
    M = p.shape[0]

    itemsize = jnp.dtype(compute_dtype).itemsize
    out_itemsize = jnp.dtype(out_dtype).itemsize
    vmem_cap = _vmem_capacity_bytes()
    vmem_budget = int(0.75 * vmem_cap)

    def vmem_need(tm, tk, tn, multi_k):
        need = 2 * (tm * tk + tk * tn) * itemsize     # double-buffered inputs
        need += 2 * tn * 4                            # bias (f32) double buffer
        need += 2 * tm * tn * out_itemsize            # output double buffer
        if multi_k:
            need += tm * tn * 4                       # f32 accumulator scratch
        return need

    # --- N: pad to a multiple of 256 only when needed (lane-dense stores) ---
    N_pad = N if N % 256 == 0 else _round_up(N, 256)

    # --- TN ---
    if N_pad % 512 == 0 and N_pad // 512 >= 2:
        TN = 512
    else:
        TN = 256

    # --- TM (M is never padded; partial edge blocks are handled by the grid) ---
    if M <= 1024:
        TM = M                                        # block == full dim is allowed
    else:
        TM = 1024

    # --- v7x megacore: make sure the parallel (M, N) grid has >= 2 blocks ------
    nm = _cdiv(M, TM)
    nn = N_pad // TN
    if nm * nn < 2 and M >= 256:
        TM = _round_up(_cdiv(M, 2), 16)
        nm = _cdiv(M, TM)

    # --- K: full-K resident if it fits the VMEM budget, else K-tile ----------
    if vmem_need(TM, K, TN, multi_k=False) <= vmem_budget:
        multi_k = False
        TK, K_pad = K, K
    else:
        multi_k = True
        TK = None
        for tk_try in (2048, 1024, 512):
            if vmem_need(TM, tk_try, TN, True) <= vmem_budget:
                TK = tk_try
                break
        if TK is None:
            TK = 512
            while TM > 256 and vmem_need(TM, TK, TN, True) > vmem_budget:
                TM = max(256, _round_up(TM // 2, 16))
            nm = _cdiv(M, TM)
        K_pad = _round_up(K, TK)

    # --- minimal padding (K only on the tiled path; N only if not 256-aligned) --
    p_in = jnp.pad(p, ((0, 0), (0, K_pad - K))) if K_pad != K else p
    if K_pad != K or N_pad != N:
        w_in = jnp.pad(w_t, ((0, K_pad - K), (0, N_pad - N)))
    else:
        w_in = w_t
    b_in = jnp.pad(b_q, ((0, 0), (0, N_pad - N))) if N_pad != N else b_q

    vmem_limit = int(min(max(vmem_need(TM, TK, TN, multi_k) + (4 << 20), 32 << 20),
                         vmem_cap))

    cost = pl.CostEstimate(
        flops=int(2 * M * K * N_pad),
        transcendentals=0,
        bytes_accessed=int(p_in.size * itemsize + w_in.size * itemsize
                           + b_in.size * 4 + M * N_pad * out_itemsize))

    if not multi_k:
        kernel = functools.partial(_qlinear_kernel_single_k,
                                   bmax=bmax, out_max=out_max)
        out = pl.pallas_call(
            kernel,
            out_shape=jax.ShapeDtypeStruct((M, N_pad), out_dtype),
            grid_spec=pltpu.PrefetchScalarGridSpec(
                num_scalar_prefetch=0,
                grid=(nm, N_pad // TN),
                in_specs=[
                    pl.BlockSpec((TM, K), lambda i, j: (i, 0)),
                    pl.BlockSpec((K, TN), lambda i, j: (0, j)),
                    pl.BlockSpec((1, TN), lambda i, j: (0, j)),
                ],
                out_specs=pl.BlockSpec((TM, TN), lambda i, j: (i, j)),
            ),
            compiler_params=pltpu.CompilerParams(
                dimension_semantics=("parallel", "parallel"),
                vmem_limit_bytes=vmem_limit),
            cost_estimate=cost,
        )(p_in, w_in, b_in)
    else:
        kernel = functools.partial(_qlinear_kernel_multi_k,
                                   bmax=bmax, out_max=out_max)
        out = pl.pallas_call(
            kernel,
            out_shape=jax.ShapeDtypeStruct((M, N_pad), out_dtype),
            grid_spec=pltpu.PrefetchScalarGridSpec(
                num_scalar_prefetch=0,
                grid=(nm, N_pad // TN, K_pad // TK),
                in_specs=[
                    pl.BlockSpec((TM, TK), lambda i, j, k: (i, k)),
                    pl.BlockSpec((TK, TN), lambda i, j, k: (k, j)),
                    pl.BlockSpec((1, TN), lambda i, j, k: (0, j)),
                ],
                out_specs=pl.BlockSpec((TM, TN), lambda i, j, k: (i, j)),
                scratch_shapes=[pltpu.VMEM((TM, TN), jnp.float32)],
            ),
            compiler_params=pltpu.CompilerParams(
                dimension_semantics=("parallel", "parallel", "arbitrary"),
                vmem_limit_bytes=vmem_limit),
            cost_estimate=cost,
        )(p_in, w_in, b_in)

    if N_pad != N:
        out = out[:, :N]
    return out.reshape(*orig_shape[:-1], N)


# ----------------------------- reference & test ------------------------------


def qlinear_reference(x, weight, bias, qbits, *, relu=False, postact=True):
    K = x.shape[-1]
    nlvar = 2 if relu else 1
    wmult = np.float32(2 ** np.floor(np.log2(np.sqrt(3.0 * nlvar / K))))
    wq = wmult * jnp.clip(weight, -qbits['wmax'], qbits['wmax'])
    z = jnp.einsum('...k,nk->...n', x, wq)
    bq = jnp.clip(bias, -qbits['bmax'], qbits['bmax']).reshape(1, -1)
    z = jnp.clip(z, -qbits['bmax'], qbits['bmax']) + bq
    z = jnp.clip(z, -qbits['bmax'], qbits['bmax'])
    if postact:
        z = jnp.clip(z, -qbits['amax'], qbits['amax'])
    return z


if __name__ == "__main__":
    # Small shapes consistent with QLinear: batch=2, seq=8, in=32, out=64.
    B, S, in_features, out_features = 2, 8, 32, 64
    qbits = {'w': 4, 'wmax': 0.5, 'b': 8, 'bmax': 2.0, 'a': 8, 'amax': 4.0}

    key = jax.random.PRNGKey(0)
    kx, kw, kb = jax.random.split(key, 3)

    x = jax.random.normal(kx, (B, S, in_features), dtype=jnp.float32)
    # nn.init.uniform_(weight, -1, 1)
    weight = jax.random.uniform(kw, (out_features, in_features),
                                dtype=jnp.float32, minval=-1.0, maxval=1.0)
    # bias ~ U(-1/sqrt(fan_in), 1/sqrt(fan_in)), fan_in = in_features
    bound = 1.0 / np.sqrt(in_features)
    bias = jax.random.uniform(kb, (out_features,), dtype=jnp.float32,
                              minval=-bound, maxval=bound)

    y_ref = qlinear_reference(x, weight, bias, qbits)

    # Exact-semantics path (f32 MXU), params prepared once (hoisted transform).
    prep32 = prepare_qlinear_params(weight, bias, qbits,
                                    compute_dtype=jnp.float32)
    y32 = qlinear_forward(x, qbits=qbits, compute_dtype=jnp.float32,
                          prepared=prep32)
    y32 = jax.block_until_ready(y32)
    assert y32.shape == (B, S, out_features)
    assert jnp.allclose(y32, y_ref, atol=2e-3, rtol=2e-3), \
        f"f32 max err {float(jnp.max(jnp.abs(y32 - y_ref)))}"

    # Default fast path (bf16 MXU inputs, f32 accumulation & epilogue),
    # also exercising the non-prepared convenience entry point.
    y16 = qlinear_forward(x, weight, bias, qbits)
    y16 = jax.block_until_ready(y16)
    assert y16.shape == (B, S, out_features)
    assert jnp.allclose(y16, y_ref, atol=4e-2, rtol=4e-2), \
        f"bf16 max err {float(jnp.max(jnp.abs(y16 - y_ref)))}"

    print("KERNEL_OK")
</pallas_src>

<mosaic_0001>
module attributes {stable_mosaic.version = 11 : i64} {
  func.func @_qlinear_kernel_single_k(%arg0: i32, %arg1: i32, %arg2: memref<16x32xf32, #tpu.memory_space<vmem>>, %arg3: memref<32x256xf32, #tpu.memory_space<vmem>>, %arg4: memref<1x256xf32, #tpu.memory_space<vmem>>, %arg5: memref<16x256xf32, #tpu.memory_space<vmem>>) attributes {dimension_semantics = [#tpu.dimension_semantics<parallel>, #tpu.dimension_semantics<parallel>], iteration_bounds = array<i64: 1, 1>, scalar_prefetch = 0 : i64, scratch_operands = 0 : i64, tpu.core_type = #tpu.core_type<tc>, window_params = [{transform_indices = @transform_0, window_bounds = array<i64: 16, 32>}, {transform_indices = @transform_1, window_bounds = array<i64: 32, 256>}, {transform_indices = @transform_2, window_bounds = array<i64: 1, 256>}, {transform_indices = @transform_3, window_bounds = array<i64: 16, 256>}]} {
    %c0 = arith.constant 0 : index
    %c0_0 = arith.constant 0 : index
    %0 = vector.load %arg2[%c0, %c0_0] : memref<16x32xf32, #tpu.memory_space<vmem>>, vector<16x32xf32>
    %c0_1 = arith.constant 0 : index
    %c0_2 = arith.constant 0 : index
    %1 = vector.load %arg3[%c0_1, %c0_2] : memref<32x256xf32, #tpu.memory_space<vmem>>, vector<32x256xf32>
    %cst = arith.constant dense<0.000000e+00> : vector<16x256xf32>
    %2 = tpu.matmul %0, %1, %cst {dimension_numbers = #tpu.dot_dimension_numbers<[1], [0], [0], [1], [0, 0, 1, 1], [], []>} : vector<16x32xf32>, vector<32x256xf32>, vector<16x256xf32> -> vector<16x256xf32>
    %cst_3 = arith.constant -2.000000e+00 : f32
    %cst_4 = arith.constant 2.000000e+00 : f32
    %3 = vector.broadcast %cst_3 : f32 to vector<16x256xf32>
    %4 = arith.maximumf %3, %2 : vector<16x256xf32>
    %5 = vector.broadcast %cst_4 : f32 to vector<16x256xf32>
    %6 = arith.minimumf %5, %4 : vector<16x256xf32>
    %c0_5 = arith.constant 0 : index
    %c0_6 = arith.constant 0 : index
    %7 = vector.load %arg4[%c0_5, %c0_6] : memref<1x256xf32, #tpu.memory_space<vmem>>, vector<1x256xf32>
    %8 = vector.broadcast %7 : vector<1x256xf32> to vector<16x256xf32>
    %9 = arith.addf %6, %8 : vector<16x256xf32>
    %cst_7 = arith.constant -2.000000e+00 : f32
    %cst_8 = arith.constant 2.000000e+00 : f32
    %10 = vector.broadcast %cst_7 : f32 to vector<16x256xf32>
    %11 = arith.maximumf %10, %9 : vector<16x256xf32>
    %12 = vector.broadcast %cst_8 : f32 to vector<16x256xf32>
    %13 = arith.minimumf %12, %11 : vector<16x256xf32>
    %c0_9 = arith.constant 0 : index
    %c0_10 = arith.constant 0 : index
    %14 = vector.load %arg5[%c0_9, %c0_10] : memref<16x256xf32, #tpu.memory_space<vmem>>, vector<16x256xf32>
    tpu.vector_store %arg5[%c0_9, %c0_10], %13 {strides = array<i32>} : memref<16x256xf32, #tpu.memory_space<vmem>>, vector<16x256xf32>,
    return
  }
  func.func @transform_0(%arg0: i32, %arg1: i32) -> (i32, i32) {
    %c0_i32 = arith.constant 0 : i32
    %c0_i32_0 = arith.constant 0 : i32
    return %arg0, %c0_i32 : i32, i32
  }
  func.func @transform_1(%arg0: i32, %arg1: i32) -> (i32, i32) {
    %c0_i32 = arith.constant 0 : i32
    %c0_i32_0 = arith.constant 0 : i32
    return %c0_i32, %arg1 : i32, i32
  }
  func.func @transform_2(%arg0: i32, %arg1: i32) -> (i32, i32) {
    %c0_i32 = arith.constant 0 : i32
    %c0_i32_0 = arith.constant 0 : i32
    return %c0_i32, %arg1 : i32, i32
  }
  func.func @transform_3(%arg0: i32, %arg1: i32) -> (i32, i32) {
    %c0_i32 = arith.constant 0 : i32
    return %arg0, %arg1 : i32, i32
  }
}

</mosaic_0001>

<bundles_post_ra>
// kernel: tpu_custom_call.1
= control target key start
LH: loop header
LB: loop body
LE: loop exit
PB: predicated region body
PF: predicated region fallthrough
CT: control target
= control target key end

     0   :  { %8 = vsyncpa [#allocation3], 0  ;;  %s366_s0 = inlined_call_operand.hbm [shape: f32[16,32], index: 0, kind: input, shape index: {}]   ;;  %s367_s1 = inlined_call_operand.hbm [shape: f32[32,256], index: 1, kind: input, shape index: {}]   ;;  %s368_s2 = inlined_call_operand.vmem [shape: f32[1,256], index: 2, kind: input, shape index: {}]   ;;  %s369_s3 = inlined_call_operand.hbm [shape: f32[16,256], index: 3, kind: output, shape index: {}]  }
   0x1   :  { %9 = vsyncpa [#allocation6], 0 }
   0x2   :  { %10 = vsyncpa [#allocation4], 0  ;;  %s293_s12 = smov [#allocation2]   ;;  %s221_s16 = scalar_lea.hbm %s366_s0, 256 }
   0x3   :  { %s16_s13 = sshll.u32 %s293_s12, 4  ;;  %p222_p0 = scmp.ne.s32.totalorder %s366_s0, %s221_s16  ;;  %s17_s13 = int_to_ptr.vmem [resolvable:$true] %s16_s13 }
   0x4   :  { %p225_p1 = scmp.lt.u32.totalorder %s221_s16, %s366_s0 }
   0x6   :  { %p227_p2 = pnand %p225_p1, %p222_p0 }
   0x8   :  { %230 = shalt.err (!%p227_p2)
}
   0x9   :  { %s231_s21 = scalar_lea.vmem %s17_s13, 256  ;;  %p236_p4 = scmp.lt.s32.totalorder %s17_s13, %s17_s13 }
   0xa   :  { %p232_p3 = scmp.ne.s32.totalorder %s17_s13, %s231_s21  ;;  %p237_p5 = scmp.lt.s32.totalorder %s231_s21, %s231_s21 }
   0xc   :  { %p238_p6 = por %p237_p5, %p236_p4 }
   0xe   :  { %p239_p7 = pnand %p238_p6, %p232_p3 }
  0x10   :  { %242 = shalt.err (!%p239_p7)
}
  0x11   :  { %s294_s22 = smov 128   ;;  %s295_s23 = smov 8  }
  0x12   :  { %22 = dma.hbm_to_vmem [thread:$0]  %s366_s0, 256, %s17_s13, [#allocation3], %s294_s22, %s294_s22, %s295_s23  }
  0x13   :  { %s296_s26 = smov [#allocation5]   ;;  %s243_s30 = scalar_lea.hbm %s367_s1, 1024 }
  0x14   :  { %s28_s27 = sshll.u32 %s296_s26, 4  ;;  %p244_p8 = scmp.ne.s32.totalorder %s367_s1, %s243_s30  ;;  %s29_s27 = int_to_ptr.vmem [resolvable:$true] %s28_s27 }
  0x15   :  { %p247_p9 = scmp.lt.u32.totalorder %s243_s30, %s367_s1 }
  0x17   :  { %p249_p10 = pnand %p247_p9, %p244_p8 }
  0x19   :  { %252 = shalt.err (!%p249_p10)
}
  0x1a   :  { %s253_s8 = scalar_lea.vmem %s29_s27, 1024  ;;  %p258_p12 = scmp.lt.s32.totalorder %s29_s27, %s29_s27 }
  0x1b   :  { %p254_p11 = scmp.ne.s32.totalorder %s29_s27, %s253_s8  ;;  %p259_p13 = scmp.lt.s32.totalorder %s253_s8, %s253_s8 }
  0x1d   :  { %p260_p0 = por %p259_p13, %p258_p12 }
  0x1f   :  { %p261_p1 = pnand %p260_p0, %p254_p11 }
  0x21   :  { %264 = shalt.err (!%p261_p1)
}
  0x22   :  { %s297_s0 = smov 256   ;;  %s298_s9 = smov 16  }
  0x23   :  { %34 = dma.hbm_to_vmem [thread:$0]  %s367_s1, 1024, %s29_s27, [#allocation6], %s297_s0, %s297_s0, %s298_s9  }
  0x24   :  { %287 = dma.done.wait [#allocation3], 256  }
  0x25   :  { %288 = vsyncadd [#allocation3], 4294967040 }
  0x26   :  { %289 = dma.done.wait [#allocation6], 1024  }
  0x27   :  { %290 = vsyncadd [#allocation6], 4294966272  ;;  %v299_v0 = vmov 0.0   ;;  %v46_v1 = vld [vmem:[#allocation5 + $0x8] sm:$0xff]  ;;  %v48_v2 = vld [vmem:[#allocation5 + $0x18] sm:$0xff]  ;;  %vm53_vm0 = vcmask 261120   ;;  %v147_v15 = vlaneseq }
  0x28   :  { %124 = vmatprep.mubr.f32.mxu0 %v299_v0  ;;  %130 = vmatprep.mubr.f32.mxu1 %v299_v0  ;;  %v45_v3 = vld [vmem:[#allocation5] sm:$0xff]  ;;  %v201_v4 = vpack.c.bf16 %v48_v2, %v46_v1  ;;  %v47_v5 = vld [vmem:[#allocation5 + $0x10] sm:$0xff]  ;;  %v50_v6 = vld [vmem:[#allocation5 + $0x28] sm:$0xff]  ;;  %s300_s13 = smov [#allocation7]  }
  0x29   :  { %v52_v7 = vld [vmem:[#allocation5 + $0x38] sm:$0xff]  ;;  %v203_v8 = vpack.c.bf16 %v47_v5, %v45_v3  ;;  %v49_v10 = vld [vmem:[#allocation5 + $0x20] sm:$0xff]  ;;  %v51_v11 = vld [vmem:[#allocation5 + $0x30] sm:$0xff]  ;;  %v148_v16 = vshrl.u32 %v147_v15, 7  ;;  %s178_s14 = sshll.u32 %s300_s13, 4  ;;  %s179_s14 = int_to_ptr.vmem [resolvable:$true] %s178_s14 }
  0x2a   :  { %v205_v9 = vpack.c.bf16 %v52_v7, %v50_v6  ;;  %202 = vmatprep.subr.bf16.mxu0 %v201_v4  ;;  %209 = vmatprep.subr.bf16.mxu1 %v201_v4  ;;  %v207_v12 = vpack.c.bf16 %v51_v11, %v49_v10  ;;  %v43_v13 = vld [vmem:[#allocation2] sm:$0xff]  ;;  %v44_v14 = vld [vmem:[#allocation2 + $0x8] sm:$0xff]  ;;  %p270_p3 = scmp.lt.s32.totalorder %s179_s14, %s179_s14 }
  0x2b   :  { %204 = vmatpush1.bf16.msra.mxu0 %v203_v8  ;;  %211 = vmatpush1.bf16.msra.mxu1 %v203_v8  ;;  %v149_v17 = vsub.s32 0, %v148_v16  ;;  %v145_v18 = vld [vmem:[%s368_s2] sm:$0x3]  ;;  %v153_v19 = vsub.s32 1, %v148_v16  ;;  %s265_s2 = scalar_lea.vmem %s179_s14, 512 }
  0x2c   :  { %206 = vmatprep.subr.bf16.mxu0 %v205_v9  ;;  %210 = vmatprep.subr.bf16.mxu1 %v205_v9  ;;  %p266_p2 = scmp.ne.s32.totalorder %s179_s14, %s265_s2  ;;  %p271_p4 = scmp.lt.s32.totalorder %s265_s2, %s265_s2 }
  0x2d   :  { %v150_v20 = vrot.slane %v145_v18, %v149_v17  ;;  %v154_v23 = vrot.slane %v145_v18, %v153_v19 }
  0x2e   :  { %p272_p5 = por %p271_p4, %p270_p3 }
  0x2f   :  { %208 = vmatpush1.bf16.msra.mxu0 %v207_v12  ;;  %212 = vmatpush1.bf16.msra.mxu1 %v207_v12 }
  0x30   :  { %p273_p6 = pnand %p272_p5, %p266_p2 }
  0x32   :  { %191 = vmatmul.mubr.msk.f32.vlgmr.msra.gmra.mrb[0].mxu0 %vm53_vm0, %v43_v13  ;;  %192 = vmatmul.mubr.msk.f32.vlgmr.msra.gmra.mrb[0].mxu1 %vm53_vm0, %v44_v14 }
 0x105   :  { %v126_v21 = vpop.f32.mrb[0].mxu0  ;;  %v132_v22 = vpop.f32.mrb[0].mxu1 }
 0x106   :  { %v193_v24 = vclamps-f32 %v126_v21, 2.0  ;;  %v195_v25 = vclamps-f32 %v132_v22, 2.0  ;;  %v128_v26 = vpop.f32.mrb[1].mxu0  ;;  %v134_v27 = vpop.f32.mrb[1].mxu1 }
 0x107   :  { %v194_v28 = vclamps-f32 %v128_v26, 2.0  ;;  %v196_v29 = vclamps-f32 %v134_v27, 2.0 }
 0x108   :  { %v157_v30 = vadd.f32 %v193_v24, %v150_v20  ;;  %v159_v31 = vadd.f32 %v195_v25, %v150_v20 }
 0x109   :  { %v158_v32 = vadd.f32 %v194_v28, %v154_v23  ;;  %v160_v33 = vadd.f32 %v196_v29, %v154_v23 }
 0x10a   :  { %v197_v34 = vclamps-f32 %v157_v30, 2.0  ;;  %v199_v35 = vclamps-f32 %v159_v31, 2.0 }
 0x10b   :  { %v198_v36 = vclamps-f32 %v158_v32, 2.0  ;;  %v200_v37 = vclamps-f32 %v160_v33, 2.0 }
 0x10c   :  { %169 = vst [vmem:[#allocation7] sm:$0xff] %v197_v34  ;;  %171 = vst [vmem:[#allocation7 + $0x10] sm:$0xff] %v199_v35 }
 0x10d   :  { %170 = vst [vmem:[#allocation7 + $0x8] sm:$0xff] %v198_v36  ;;  %172 = vst [vmem:[#allocation7 + $0x18] sm:$0xff] %v200_v37 }
 0x10e   :  { %276 = shalt.err (!%p273_p6)
}
 0x10f   :  { %s277_s17 = scalar_lea.hbm %s369_s3, 512 }
 0x110   :  { %p278_p7 = scmp.ne.s32.totalorder %s369_s3, %s277_s17  ;;  %p281_p8 = scmp.lt.u32.totalorder %s277_s17, %s369_s3 }
 0x112   :  { %p283_p9 = pnand %p281_p8, %p278_p7 }
 0x114   :  { %286 = shalt.err (!%p283_p9)
}
 0x115   :  { %184 = dma.vmem_to_hbm [thread:$0]  %s179_s14, 512, %s369_s3, [#allocation4], %s297_s0, %s297_s0, %s298_s9  }
 0x116   :  { %291 = dma.done.wait [#allocation4], 512  }
 0x117   :  { %292 = vsyncadd [#allocation4], 4294966784 }
 0x118   :  { %188 = vsyncpa [#allocation3], 1 }
 0x119   :  { %189 = vsyncpa [#allocation6], 1 }
 0x11a   :  { %190 = vsyncpa [#allocation4], 1 }

</bundles_post_ra>
